<compile_context>
chip_gen: v6e
topology: v6e:2x2x1
jax: 0.10.0
libtpu: 0.0.40
codegen_flags: <defaults>
</compile_context>

<pallas_src>
import functools

import jax
import jax.numpy as jnp
from jax.experimental import pallas as pl
from jax.experimental.pallas import tpu as pltpu

HIDDEN = (256, 128, 128, 64, 32, 16, 1)
BN_EPS = 1e-5
NUM_BN_LAYERS = 5     # BatchNorm1d follows Linear layers 0..4 in the PyTorch net
NUM_RELU_LAYERS = 6   # ReLU follows Linear layers 0..5
SUBLANE_ALIGN = 16    # bf16 sublane packing (also satisfies f32's 8)


def _round_up(x, m):
    return (x + m - 1) // m * m


def mlp_kernel(x_ref, w_ref, b_ref, o_ref, *, layer_dims, row_offsets):
    """One batch tile of the fused, transposed MLP forward pass.

    x_ref : (input_dim, tile_b) f32        -- batch on the lane dim
    w_ref : (rows_pad, max_in) mm_dtype    -- all W^T stacked along sublanes
    b_ref : (rows_pad, 1) f32              -- all biases stacked along sublanes
    o_ref : (1, tile_b) f32                -- lane-dense sigmoid output

    Matmul operands are mm_dtype (bf16 by default) with f32 accumulation; the
    bias/ReLU/sigmoid chain stays f32 (v5e VPU has no bf16 elementwise).
    """
    mm_dtype = w_ref.dtype
    h = x_ref[...].astype(mm_dtype)                       # (input_dim, tile_b)
    n_layers = len(layer_dims) - 1
    for li in range(n_layers):
        fan_in, fan_out = layer_dims[li], layer_dims[li + 1]
        off = row_offsets[li]                             # static, 16-aligned
        w = w_ref[off:off + fan_out, :fan_in]             # (fan_out, fan_in)
        b = b_ref[off:off + fan_out, :]                   # (fan_out, 1) f32
        # MXU: M=fan_out, K=fan_in, N=tile_b (full lanes / MXU columns).
        z = jnp.dot(w, h, preferred_element_type=jnp.float32) + b
        if li < n_layers - 1:
            # Linear (+ folded BN) + ReLU (+ Dropout = identity in eval mode);
            # cast once at the layer boundary, activation stays bf16.
            h = jnp.maximum(z, 0.0).astype(mm_dtype)
        else:
            # Final Linear(16->1) + Sigmoid -> (1, tile_b) lane-dense store.
            o_ref[...] = jax.nn.sigmoid(z)


def fold_batchnorm(w, b, gamma, beta, mean, var, eps=BN_EPS):
    """Fold eval-mode BatchNorm1d into the preceding Linear (w: [in, out])."""
    scale = gamma / jnp.sqrt(var + eps)
    return w * scale[None, :], (b - mean) * scale + beta


def init_params(key, input_dim):
    """PyTorch-default-style init; eval-mode BN folded into layers 0..4."""
    dims = (input_dim,) + HIDDEN
    params = []
    for i, (fan_in, fan_out) in enumerate(zip(dims[:-1], dims[1:])):
        key, kw, kb = jax.random.split(key, 3)
        bound = 1.0 / (fan_in ** 0.5)
        w = jax.random.uniform(kw, (fan_in, fan_out), jnp.float32, -bound, bound)
        b = jax.random.uniform(kb, (fan_out,), jnp.float32, -bound, bound)
        if i < NUM_BN_LAYERS:
            # TODO(synk): for a trained checkpoint, fold its real
            # running_mean/running_var/gamma/beta here instead of the defaults.
            w, b = fold_batchnorm(
                w, b,
                gamma=jnp.ones((fan_out,), jnp.float32),
                beta=jnp.zeros((fan_out,), jnp.float32),
                mean=jnp.zeros((fan_out,), jnp.float32),
                var=jnp.ones((fan_out,), jnp.float32))
        params.append((w, b))
    return params


def pack_params(params, compute_dtype):
    """Pack all layers into one transposed-weight slab and one bias slab.

    Weights are stored transposed (fan_out, fan_in), stacked along sublanes at
    16-row-aligned offsets and lane-padded to the max fan_in; biases are
    (fan_out, 1) columns stacked at the same offsets.  Row offsets are static
    Python ints used for static in-kernel slices.
    """
    max_in = _round_up(max(w.shape[0] for w, _ in params), 128)
    row_offsets, rows = [], 0
    for w, _ in params:
        row_offsets.append(rows)
        rows += _round_up(w.shape[1], SUBLANE_ALIGN)
    w_pack = jnp.zeros((rows, max_in), compute_dtype)
    b_pack = jnp.zeros((rows, 1), jnp.float32)
    for (w, b), off in zip(params, row_offsets):
        fan_in, fan_out = w.shape
        w_pack = w_pack.at[off:off + fan_out, :fan_in].set(
            w.T.astype(compute_dtype))
        b_pack = b_pack.at[off:off + fan_out, 0].set(b)
    return w_pack, b_pack, tuple(row_offsets)


@functools.partial(jax.jit, static_argnames=("tile_b", "compute_dtype"))
def binary_classifier(x, params, *, tile_b=1024, compute_dtype=jnp.bfloat16):
    batch, input_dim = x.shape

    # Clamp the tile so the "parallel" batch axis has >= 2 grid steps whenever
    # the batch allows it (v7x megacore), while staying 128-lane aligned.
    half_batch = max(128, _round_up(pl.cdiv(batch, 2), 128))
    tile_b = max(128, min(tile_b, half_batch))
    num_tiles = pl.cdiv(batch, tile_b)
    padded = num_tiles * tile_b
    if padded != batch:
        x = jnp.pad(x, ((0, padded - batch), (0, 0)))
    # Transposed input: batch on the lane dim -> every matmul N-dim = tile_b.
    x_t = x.T                                     # (input_dim, padded)

    w_pack, b_pack, row_offsets = pack_params(params, compute_dtype)
    layer_dims = (input_dim,) + tuple(w.shape[1] for w, _ in params)
    kernel = functools.partial(mlp_kernel, layer_dims=layer_dims,
                               row_offsets=row_offsets)

    flops = 2 * padded * sum(fi * fo
                             for fi, fo in zip(layer_dims[:-1], layer_dims[1:]))
    bytes_accessed = (x_t.size * x_t.dtype.itemsize
                      + w_pack.size * w_pack.dtype.itemsize
                      + b_pack.size * b_pack.dtype.itemsize
                      + padded * 4)
    cost = pl.CostEstimate(flops=flops,
                           transcendentals=2 * padded,  # sigmoid = exp + recip
                           bytes_accessed=bytes_accessed)

    # VMEM budget: double-buffered operands + widest f32 z / bf16 h activation.
    # Kept well under v5e's 16 MiB scoped default at tile_b<=1024; the explicit
    # limit (capped for v7x's 64 MiB physical VMEM) adds headroom for larger tiles.
    compute_itemsize = jnp.dtype(compute_dtype).itemsize
    resident = (w_pack.size * w_pack.dtype.itemsize
                + b_pack.size * b_pack.dtype.itemsize)
    per_tile = (input_dim * tile_b * 4 + tile_b * 4
                + max(layer_dims) * tile_b * (4 + compute_itemsize))
    vmem_limit = int(min(48 << 20,
                         max(16 << 20, 2 * (resident + per_tile) + (4 << 20))))

    out = pl.pallas_call(
        kernel,
        grid=(num_tiles,),
        in_specs=[
            # x tile streams over the batch grid; the packed params use
            # constant index_maps so they are fetched once and stay resident.
            pl.BlockSpec((input_dim, tile_b), lambda i: (0, i)),
            pl.BlockSpec(w_pack.shape, lambda i: (0, 0)),
            pl.BlockSpec(b_pack.shape, lambda i: (0, 0)),
        ],
        out_specs=pl.BlockSpec((1, tile_b), lambda i: (0, i)),
        out_shape=jax.ShapeDtypeStruct((1, padded), jnp.float32),
        compiler_params=pltpu.CompilerParams(
            dimension_semantics=("parallel",),
            vmem_limit_bytes=vmem_limit),
        cost_estimate=cost,
    )(x_t, w_pack, b_pack)

    # Back to the PyTorch (batch, 1) layout; drop padding rows.
    return out[0, :batch][:, None]


def reference(x, params):
    """Pure-JAX reference for the same eval-mode forward pass."""
    h = x
    for i, (w, b) in enumerate(params):
        h = h @ w + b
        if i < NUM_RELU_LAYERS:
            h = jnp.maximum(h, 0.0)
    return jax.nn.sigmoid(h)


if __name__ == "__main__":
    key = jax.random.PRNGKey(0)
    k_x, k_x2, k_x3, k_p = jax.random.split(key, 4)

    input_dim = 32
    params = init_params(k_p, input_dim)

    # f32 path, single tile (batch=8 -> one 128-row tile): tight check.
    x_small = jax.random.normal(k_x, (8, input_dim), dtype=jnp.float32)
    out = jax.block_until_ready(
        binary_classifier(x_small, params, compute_dtype=jnp.float32))
    ref = reference(x_small, params)
    assert out.shape == (8, 1), out.shape
    assert jnp.allclose(out, ref, atol=2e-5, rtol=1e-5)

    # f32 path, multi-tile grid (300 rows -> 3 tiles of 128).
    x_mid = jax.random.normal(k_x2, (300, input_dim), dtype=jnp.float32)
    out_mid = jax.block_until_ready(
        binary_classifier(x_mid, params, tile_b=128,
                          compute_dtype=jnp.float32))
    ref_mid = reference(x_mid, params)
    assert out_mid.shape == (300, 1), out_mid.shape
    assert jnp.allclose(out_mid, ref_mid, atol=2e-5, rtol=1e-5)

    # Default fast path: bf16 MXU operands / f32 accumulation, tile_b=1024
    # (batch=2048 -> 2 grid steps, megacore-shardable on v7x).
    x_big = jax.random.normal(k_x3, (2048, input_dim), dtype=jnp.float32)
    out_big = jax.block_until_ready(binary_classifier(x_big, params))
    ref_big = reference(x_big, params)
    assert out_big.shape == (2048, 1), out_big.shape
    assert jnp.allclose(out_big, ref_big, atol=3e-2)

    print("KERNEL_OK")
</pallas_src>

<mosaic_0001>
module attributes {stable_mosaic.version = 11 : i64} {
  func.func @mlp_kernel(%arg0: i32, %arg1: memref<32x128xf32, #tpu.memory_space<vmem>>, %arg2: memref<640x256xf32, #tpu.memory_space<vmem>>, %arg3: memref<640x1xf32, #tpu.memory_space<vmem>>, %arg4: memref<1x128xf32, #tpu.memory_space<vmem>>) attributes {dimension_semantics = [#tpu.dimension_semantics<parallel>], iteration_bounds = array<i64: 1>, scalar_prefetch = 0 : i64, scratch_operands = 0 : i64, tpu.core_type = #tpu.core_type<tc>, window_params = [{transform_indices = @transform_0, window_bounds = array<i64: 32, 128>}, {pipeline_mode = #tpu.pipeline_mode<synchronous>, transform_indices = @transform_1, window_bounds = array<i64: 640, 256>}, {pipeline_mode = #tpu.pipeline_mode<synchronous>, transform_indices = @transform_2, window_bounds = array<i64: 640, 1>}, {transform_indices = @transform_3, window_bounds = array<i64: 1, 128>}]} {
    %c0 = arith.constant 0 : index
    %c0_0 = arith.constant 0 : index
    %0 = vector.load %arg1[%c0, %c0_0] : memref<32x128xf32, #tpu.memory_space<vmem>>, vector<32x128xf32>
    %c0_1 = arith.constant 0 : index
    %c0_2 = arith.constant 0 : index
    %1 = vector.load %arg2[%c0_1, %c0_2] : memref<640x256xf32, #tpu.memory_space<vmem>>, vector<256x32xf32>
    %c0_3 = arith.constant 0 : index
    %c0_4 = arith.constant 0 : index
    %2 = vector.load %arg3[%c0_3, %c0_4] : memref<640x1xf32, #tpu.memory_space<vmem>>, vector<256x1xf32>
    %cst = arith.constant dense<0.000000e+00> : vector<256x128xf32>
    %3 = tpu.matmul %1, %0, %cst {dimension_numbers = #tpu.dot_dimension_numbers<[1], [0], [0], [1], [0, 0, 1, 1], [], []>} : vector<256x32xf32>, vector<32x128xf32>, vector<256x128xf32> -> vector<256x128xf32>
    %4 = vector.broadcast %2 : vector<256x1xf32> to vector<256x128xf32>
    %5 = arith.addf %3, %4 : vector<256x128xf32>
    %cst_5 = arith.constant 0.000000e+00 : f32
    %6 = vector.broadcast %cst_5 : f32 to vector<256x128xf32>
    %7 = arith.maximumf %5, %6 : vector<256x128xf32>
    %c256 = arith.constant 256 : index
    %c0_6 = arith.constant 0 : index
    %8 = vector.load %arg2[%c256, %c0_6] : memref<640x256xf32, #tpu.memory_space<vmem>>, vector<128x256xf32>
    %c256_7 = arith.constant 256 : index
    %c0_8 = arith.constant 0 : index
    %9 = vector.load %arg3[%c256_7, %c0_8] : memref<640x1xf32, #tpu.memory_space<vmem>>, vector<128x1xf32>
    %cst_9 = arith.constant dense<0.000000e+00> : vector<128x128xf32>
    %10 = tpu.matmul %8, %7, %cst_9 {dimension_numbers = #tpu.dot_dimension_numbers<[1], [0], [0], [1], [0, 0, 1, 1], [], []>} : vector<128x256xf32>, vector<256x128xf32>, vector<128x128xf32> -> vector<128x128xf32>
    %11 = vector.broadcast %9 : vector<128x1xf32> to vector<128x128xf32>
    %12 = arith.addf %10, %11 : vector<128x128xf32>
    %cst_10 = arith.constant 0.000000e+00 : f32
    %13 = vector.broadcast %cst_10 : f32 to vector<128x128xf32>
    %14 = arith.maximumf %12, %13 : vector<128x128xf32>
    %c384 = arith.constant 384 : index
    %c0_11 = arith.constant 0 : index
    %15 = vector.load %arg2[%c384, %c0_11] : memref<640x256xf32, #tpu.memory_space<vmem>>, vector<128x128xf32>
    %c384_12 = arith.constant 384 : index
    %c0_13 = arith.constant 0 : index
    %16 = vector.load %arg3[%c384_12, %c0_13] : memref<640x1xf32, #tpu.memory_space<vmem>>, vector<128x1xf32>
    %cst_14 = arith.constant dense<0.000000e+00> : vector<128x128xf32>
    %17 = tpu.matmul %15, %14, %cst_14 {dimension_numbers = #tpu.dot_dimension_numbers<[1], [0], [0], [1], [0, 0, 1, 1], [], []>} : vector<128x128xf32>, vector<128x128xf32>, vector<128x128xf32> -> vector<128x128xf32>
    %18 = vector.broadcast %16 : vector<128x1xf32> to vector<128x128xf32>
    %19 = arith.addf %17, %18 : vector<128x128xf32>
    %cst_15 = arith.constant 0.000000e+00 : f32
    %20 = vector.broadcast %cst_15 : f32 to vector<128x128xf32>
    %21 = arith.maximumf %19, %20 : vector<128x128xf32>
    %c512 = arith.constant 512 : index
    %c0_16 = arith.constant 0 : index
    %22 = vector.load %arg2[%c512, %c0_16] : memref<640x256xf32, #tpu.memory_space<vmem>>, vector<64x128xf32>
    %c512_17 = arith.constant 512 : index
    %c0_18 = arith.constant 0 : index
    %23 = vector.load %arg3[%c512_17, %c0_18] : memref<640x1xf32, #tpu.memory_space<vmem>>, vector<64x1xf32>
    %cst_19 = arith.constant dense<0.000000e+00> : vector<64x128xf32>
    %24 = tpu.matmul %22, %21, %cst_19 {dimension_numbers = #tpu.dot_dimension_numbers<[1], [0], [0], [1], [0, 0, 1, 1], [], []>} : vector<64x128xf32>, vector<128x128xf32>, vector<64x128xf32> -> vector<64x128xf32>
    %25 = vector.broadcast %23 : vector<64x1xf32> to vector<64x128xf32>
    %26 = arith.addf %24, %25 : vector<64x128xf32>
    %cst_20 = arith.constant 0.000000e+00 : f32
    %27 = vector.broadcast %cst_20 : f32 to vector<64x128xf32>
    %28 = arith.maximumf %26, %27 : vector<64x128xf32>
    %c576 = arith.constant 576 : index
    %c0_21 = arith.constant 0 : index
    %29 = vector.load %arg2[%c576, %c0_21] : memref<640x256xf32, #tpu.memory_space<vmem>>, vector<32x64xf32>
    %c576_22 = arith.constant 576 : index
    %c0_23 = arith.constant 0 : index
    %30 = vector.load %arg3[%c576_22, %c0_23] : memref<640x1xf32, #tpu.memory_space<vmem>>, vector<32x1xf32>
    %cst_24 = arith.constant dense<0.000000e+00> : vector<32x128xf32>
    %31 = tpu.matmul %29, %28, %cst_24 {dimension_numbers = #tpu.dot_dimension_numbers<[1], [0], [0], [1], [0, 0, 1, 1], [], []>} : vector<32x64xf32>, vector<64x128xf32>, vector<32x128xf32> -> vector<32x128xf32>
    %32 = vector.broadcast %30 : vector<32x1xf32> to vector<32x128xf32>
    %33 = arith.addf %31, %32 : vector<32x128xf32>
    %cst_25 = arith.constant 0.000000e+00 : f32
    %34 = vector.broadcast %cst_25 : f32 to vector<32x128xf32>
    %35 = arith.maximumf %33, %34 : vector<32x128xf32>
    %c608 = arith.constant 608 : index
    %c0_26 = arith.constant 0 : index
    %36 = vector.load %arg2[%c608, %c0_26] : memref<640x256xf32, #tpu.memory_space<vmem>>, vector<16x32xf32>
    %c608_27 = arith.constant 608 : index
    %c0_28 = arith.constant 0 : index
    %37 = vector.load %arg3[%c608_27, %c0_28] : memref<640x1xf32, #tpu.memory_space<vmem>>, vector<16x1xf32>
    %cst_29 = arith.constant dense<0.000000e+00> : vector<16x128xf32>
    %38 = tpu.matmul %36, %35, %cst_29 {dimension_numbers = #tpu.dot_dimension_numbers<[1], [0], [0], [1], [0, 0, 1, 1], [], []>} : vector<16x32xf32>, vector<32x128xf32>, vector<16x128xf32> -> vector<16x128xf32>
    %39 = vector.broadcast %37 : vector<16x1xf32> to vector<16x128xf32>
    %40 = arith.addf %38, %39 : vector<16x128xf32>
    %cst_30 = arith.constant 0.000000e+00 : f32
    %41 = vector.broadcast %cst_30 : f32 to vector<16x128xf32>
    %42 = arith.maximumf %40, %41 : vector<16x128xf32>
    %c624 = arith.constant 624 : index
    %c0_31 = arith.constant 0 : index
    %43 = vector.load %arg2[%c624, %c0_31] : memref<640x256xf32, #tpu.memory_space<vmem>>, vector<1x16xf32>
    %c624_32 = arith.constant 624 : index
    %c0_33 = arith.constant 0 : index
    %44 = vector.load %arg3[%c624_32, %c0_33] : memref<640x1xf32, #tpu.memory_space<vmem>>, vector<1x1xf32>
    %cst_34 = arith.constant dense<0.000000e+00> : vector<1x128xf32>
    %45 = tpu.matmul %43, %42, %cst_34 {dimension_numbers = #tpu.dot_dimension_numbers<[1], [0], [0], [1], [0, 0, 1, 1], [], []>} : vector<1x16xf32>, vector<16x128xf32>, vector<1x128xf32> -> vector<1x128xf32>
    %46 = vector.broadcast %44 : vector<1x1xf32> to vector<1x128xf32>
    %47 = arith.addf %45, %46 : vector<1x128xf32>
    %48 = arith.negf %47 : vector<1x128xf32>
    %49 = math.exp %48 : vector<1x128xf32>
    %cst_35 = arith.constant 1.000000e+00 : f32
    %50 = vector.broadcast %cst_35 : f32 to vector<1x128xf32>
    %51 = arith.addf %50, %49 : vector<1x128xf32>
    %52 = arith.divf %50, %51 : vector<1x128xf32>
    %c0_36 = arith.constant 0 : index
    %c0_37 = arith.constant 0 : index
    %53 = vector.load %arg4[%c0_36, %c0_37] : memref<1x128xf32, #tpu.memory_space<vmem>>, vector<1x128xf32>
    tpu.vector_store %arg4[%c0_36, %c0_37], %52 {strides = array<i32>} : memref<1x128xf32, #tpu.memory_space<vmem>>, vector<1x128xf32>,
    return
  }
  func.func @transform_0(%arg0: i32) -> (i32, i32) {
    %c0_i32 = arith.constant 0 : i32
    %c0_i32_0 = arith.constant 0 : i32
    return %c0_i32, %arg0 : i32, i32
  }
  func.func @transform_1(%arg0: i32) -> (i32, i32) {
    %c0_i32 = arith.constant 0 : i32
    %c0_i32_0 = arith.constant 0 : i32
    %c0_i32_1 = arith.constant 0 : i32
    return %c0_i32, %c0_i32_0 : i32, i32
  }
  func.func @transform_2(%arg0: i32) -> (i32, i32) {
    %c0_i32 = arith.constant 0 : i32
    %c0_i32_0 = arith.constant 0 : i32
    %c0_i32_1 = arith.constant 0 : i32
    return %c0_i32, %c0_i32_0 : i32, i32
  }
  func.func @transform_3(%arg0: i32) -> (i32, i32) {
    %c0_i32 = arith.constant 0 : i32
    %c0_i32_0 = arith.constant 0 : i32
    return %c0_i32, %arg0 : i32, i32
  }
}

</mosaic_0001>

<bundles_post_ra>
// kernel: binary_classifier.1
= control target key start
LH: loop header
LB: loop body
LE: loop exit
PB: predicated region body
PF: predicated region fallthrough
CT: control target
= control target key end

     0   :  { %v2084_v0 = vmov 0   ;;  %vm242_vm0 = vcmask 261120   ;;  %vm1355_vm1 = vcmask 523264   ;;  %vm2086_vm2 = vmmov 0   ;;  %s2766_s2 = inlined_call_operand.vmem [shape: f32[640,1], index: 2, kind: input, shape index: {}]   ;;  %s2767_s0 = inlined_call_operand.vmem [shape: f32[32,128], index: 0, kind: input, shape index: {}]   ;;  %s2768_s1 = inlined_call_operand.vmem [shape: f32[640,256], index: 1, kind: input, shape index: {}]   ;;  %s2769_s3 = inlined_call_operand.vmem [shape: f32[1,128], index: 3, kind: output, shape index: {}]  }
   0x1   :  { %2079 = vset.pattern.permute.xlu1 %v2084_v0  ;;  %2078 = vset.pattern.permute.xlu0 %v2084_v0  ;;  %v81_v1 = vld [vmem:[%s2766_s2 + $0xf8] sm:$0xff]  ;;  %v80_v2 = vld [vmem:[%s2766_s2 + $0xf0] sm:$0xff]  ;;  %v18_v6 = vld [vmem:[%s2768_s1] sm:$0xff]  ;;  %vm1561_vm3 = vcmask 130048  }
   0x2   :  { %v17_v3 = vld [vmem:[%s2767_s0 + $0x18] sm:$0xff]  ;;  %239 = vperm.xlu0 %2078, %v81_v1   ;;  %234 = vperm.xlu1 %2079, %v80_v2   ;;  %v16_v4 = vld [vmem:[%s2767_s0 + $0x10] sm:$0xff]  ;;  %v15_v8 = vld [vmem:[%s2767_s0 + $0x8] sm:$0xff] }
   0x3   :  { %1879 = vmatprep.subr.mxu0 %v17_v3  ;;  %v65_v5 = vld [vmem:[%s2766_s2 + $0x78] sm:$0xff]  ;;  %v64_v7 = vld [vmem:[%s2766_s2 + $0x70] sm:$0xff]  ;;  %1887 = vmatprep.mubr.msk.f32.mxu0 %vm242_vm0, %v18_v6  ;;  %v14_v9 = vld [vmem:[%s2767_s0] sm:$0xff] }
   0x4   :  { %1880 = vmatpush3.msra.mxu0 %v17_v3  ;;  %v79_v10 = vld [vmem:[%s2766_s2 + $0xe8] sm:$0xff]  ;;  %v19_v12 = vld [vmem:[%s2768_s1 + $0x10] sm:$0xff]  ;;  %v20_v13 = vld [vmem:[%s2768_s1 + $0x20] sm:$0xff] }
   0x5   :  { %1881 = vmatprep.subr.mxu0 %v16_v4  ;;  %v63_v11 = vld [vmem:[%s2766_s2 + $0x68] sm:$0xff]  ;;  %v78_v14 = vld [vmem:[%s2766_s2 + $0xe0] sm:$0xff]  ;;  %v21_v16 = vld [vmem:[%s2768_s1 + $0x30] sm:$0xff] }
   0x6   :  { %1882 = vmatpush3.msra.mxu0 %v16_v4  ;;  %159 = vperm.xlu0 %2078, %v65_v5   ;;  %v62_v15 = vld [vmem:[%s2766_s2 + $0x60] sm:$0xff]  ;;  %v77_v18 = vld [vmem:[%s2766_s2 + $0xd8] sm:$0xff]  ;;  %v23_v20 = vld [vmem:[%s2768_s1 + $0x50] sm:$0xff] }
   0x7   :  { %154 = vperm.xlu1 %2079, %v64_v7   ;;  %1883 = vmatprep.subr.mxu0 %v15_v8  ;;  %v22_v17 = vld [vmem:[%s2768_s1 + $0x40] sm:$0xff]  ;;  %v61_v19 = vld [vmem:[%s2766_s2 + $0x58] sm:$0xff]  ;;  %v76_v22 = vld [vmem:[%s2766_s2 + $0xd0] sm:$0xff] }
   0x8   :  { %1884 = vmatpush3.msra.mxu0 %v15_v8  ;;  %v24_v21 = vld [vmem:[%s2768_s1 + $0x60] sm:$0xff]  ;;  %v60_v23 = vld [vmem:[%s2766_s2 + $0x50] sm:$0xff]  ;;  %v75_v26 = vld [vmem:[%s2766_s2 + $0xc8] sm:$0xff] }
   0x9   :  { %1885 = vmatprep.subr.mxu0 %v14_v9  ;;  %v25_v24 = vld [vmem:[%s2768_s1 + $0x70] sm:$0xff]  ;;  %v26_v25 = vld [vmem:[%s2768_s1 + $0x80] sm:$0xff]  ;;  %v59_v27 = vld [vmem:[%s2766_s2 + $0x48] sm:$0xff] }
   0xa   :  { %1886 = vmatpush3.msra.mxu0 %v14_v9  ;;  %229 = vperm.xlu0 %2078, %v79_v10   ;;  %v27_v28 = vld [vmem:[%s2768_s1 + $0x90] sm:$0xff]  ;;  %v28_v29 = vld [vmem:[%s2768_s1 + $0xa0] sm:$0xff]  ;;  %v73_v34 = vld [vmem:[%s2766_s2 + $0xb8] sm:$0xff] }
   0xb   :  { %149 = vperm.xlu1 %2079, %v63_v11   ;;  %1888 = vmatmul.mubr.msk.f32.vlgmr.msra.gmra.mxu0 %vm242_vm0, %v19_v12  ;;  %v74_v30 = vld [vmem:[%s2766_s2 + $0xc0] sm:$0xff]  ;;  %v29_v32 = vld [vmem:[%s2768_s1 + $0xb0] sm:$0xff]  ;;  %v57_v35 = vld [vmem:[%s2766_s2 + $0x38] sm:$0xff] }
   0xc   :  { %1890 = vmatprep.mubr.msk.f32.mxu0 %vm242_vm0, %v20_v13  ;;  %v58_v31 = vld [vmem:[%s2766_s2 + $0x40] sm:$0xff]  ;;  %v31_v36 = vld [vmem:[%s2768_s1 + $0xd0] sm:$0xff]  ;;  %v71_v42 = vld [vmem:[%s2766_s2 + $0xa8] sm:$0xff] }
   0xd   :  { %v30_v33 = vld [vmem:[%s2768_s1 + $0xc0] sm:$0xff]  ;;  %v72_v38 = vld [vmem:[%s2766_s2 + $0xb0] sm:$0xff]  ;;  %v55_v43 = vld [vmem:[%s2766_s2 + $0x28] sm:$0xff] }
   0xe   :  { %224 = vperm.xlu0 %2078, %v78_v14   ;;  %v32_v37 = vld [vmem:[%s2768_s1 + $0xe0] sm:$0xff]  ;;  %v56_v39 = vld [vmem:[%s2766_s2 + $0x30] sm:$0xff]  ;;  %v69_v50 = vld [vmem:[%s2766_s2 + $0x98] sm:$0xff] }
   0xf   :  { %144 = vperm.xlu1 %2079, %v62_v15   ;;  %1891 = vmatmul.mubr.msk.f32.gmra.mxu0 %vm242_vm0, %v21_v16  ;;  %v33_v40 = vld [vmem:[%s2768_s1 + $0xf0] sm:$0xff]  ;;  %v34_v41 = vld [vmem:[%s2768_s1 + $0x100] sm:$0xff]  ;;  %v53_v51 = vld [vmem:[%s2766_s2 + $0x18] sm:$0xff] }
  0x10   :  { %1893 = vmatprep.mubr.msk.f32.mxu0 %vm242_vm0, %v22_v17  ;;  %v35_v44 = vld [vmem:[%s2768_s1 + $0x110] sm:$0xff]  ;;  %v36_v45 = vld [vmem:[%s2768_s1 + $0x120] sm:$0xff]  ;;  %v67_v58 = vld [vmem:[%s2766_s2 + $0x88] sm:$0xff] }
  0x11   :  { %v70_v46 = vld [vmem:[%s2766_s2 + $0xa0] sm:$0xff]  ;;  %v37_v48 = vld [vmem:[%s2768_s1 + $0x130] sm:$0xff]  ;;  %v51_v59 = vld [vmem:[%s2766_s2 + $0x8] sm:$0xff] }
  0x12   :  { %219 = vperm.xlu0 %2078, %v77_v18   ;;  %v54_v47 = vld [vmem:[%s2766_s2 + $0x20] sm:$0xff]  ;;  %v39_v52 = vld [vmem:[%s2768_s1 + $0x150] sm:$0xff]  ;;  %v643_v2 = vld [vmem:[%s2766_s2 + $0x178] sm:$0xff] }
  0x13   :  { %139 = vperm.xlu1 %2079, %v61_v19   ;;  %1894 = vmatmul.mubr.msk.f32.gmra.mxu0 %vm242_vm0, %v23_v20  ;;  %v38_v49 = vld [vmem:[%s2768_s1 + $0x140] sm:$0xff]  ;;  %v68_v54 = vld [vmem:[%s2766_s2 + $0x90] sm:$0xff]  ;;  %v641_v6 = vld [vmem:[%s2766_s2 + $0x168] sm:$0xff] }
  0x14   :  { %1896 = vmatprep.mubr.msk.f32.mxu0 %vm242_vm0, %v24_v21  ;;  %v40_v53 = vld [vmem:[%s2768_s1 + $0x160] sm:$0xff]  ;;  %v52_v55 = vld [vmem:[%s2766_s2 + $0x10] sm:$0xff]  ;;  %v639_v9 = vld [vmem:[%s2766_s2 + $0x158] sm:$0xff] }
  0x15   :  { %v41_v56 = vld [vmem:[%s2768_s1 + $0x170] sm:$0xff]  ;;  %v42_v57 = vld [vmem:[%s2768_s1 + $0x180] sm:$0xff]  ;;  %v637_v11 = vld [vmem:[%s2766_s2 + $0x148] sm:$0xff] }
  0x16   :  { %214 = vperm.xlu0 %2078, %v76_v22   ;;  %v43_v60 = vld [vmem:[%s2768_s1 + $0x190] sm:$0xff]  ;;  %v44_v61 = vld [vmem:[%s2768_s1 + $0x1a0] sm:$0xff]  ;;  %v635_v13 = vld [vmem:[%s2766_s2 + $0x138] sm:$0xff] }
  0x17   :  { %134 = vperm.xlu1 %2079, %v60_v23   ;;  %1897 = vmatmul.mubr.msk.f32.gmra.mxu0 %vm242_vm0, %v25_v24  ;;  %v66_v62 = vld [vmem:[%s2766_s2 + $0x80] sm:$0xff]  ;;  %v45_v0 = vld [vmem:[%s2768_s1 + $0x1b0] sm:$0xff]  ;;  %v633_v15 = vld [vmem:[%s2766_s2 + $0x128] sm:$0xff] }
  0x18   :  { %1899 = vmatprep.mubr.msk.f32.mxu0 %vm242_vm0, %v26_v25  ;;  %v50_v63 = vld [vmem:[%s2766_s2] sm:$0xff]  ;;  %v642_v3 = vld [vmem:[%s2766_s2 + $0x170] sm:$0xff]  ;;  %v631_v17 = vld [vmem:[%s2766_s2 + $0x118] sm:$0xff] }
  0x19   :  { %v46_v1 = vld [vmem:[%s2768_s1 + $0x1c0] sm:$0xff]  ;;  %v47_v4 = vld [vmem:[%s2768_s1 + $0x1d0] sm:$0xff]  ;;  %v629_v19 = vld [vmem:[%s2766_s2 + $0x108] sm:$0xff] }
  0x1a   :  { %209 = vperm.xlu0 %2078, %v75_v26   ;;  %v48_v5 = vld [vmem:[%s2768_s1 + $0x1e0] sm:$0xff]  ;;  %v49_v8 = vld [vmem:[%s2768_s1 + $0x1f0] sm:$0xff]  ;;  %v916_v21 = vld [vmem:[%s2766_s2 + $0x1f8] sm:$0xff] }
  0x1b   :  { %129 = vperm.xlu1 %2079, %v59_v27   ;;  %1900 = vmatmul.mubr.msk.f32.gmra.mxu0 %vm242_vm0, %v27_v28  ;;  %v640_v7 = vld [vmem:[%s2766_s2 + $0x160] sm:$0xff]  ;;  %v638_v10 = vld [vmem:[%s2766_s2 + $0x150] sm:$0xff]  ;;  %v914_v23 = vld [vmem:[%s2766_s2 + $0x1e8] sm:$0xff] }
  0x1c   :  { %1902 = vmatprep.mubr.msk.f32.mxu0 %vm242_vm0, %v28_v29  ;;  %v636_v12 = vld [vmem:[%s2766_s2 + $0x140] sm:$0xff]  ;;  %v634_v14 = vld [vmem:[%s2766_s2 + $0x130] sm:$0xff]  ;;  %v912_v25 = vld [vmem:[%s2766_s2 + $0x1d8] sm:$0xff] }
  0x1d   :  { %v632_v16 = vld [vmem:[%s2766_s2 + $0x120] sm:$0xff]  ;;  %v630_v18 = vld [vmem:[%s2766_s2 + $0x110] sm:$0xff]  ;;  %v910_v27 = vld [vmem:[%s2766_s2 + $0x1c8] sm:$0xff] }
  0x1e   :  { %204 = vperm.xlu0 %2078, %v74_v30   ;;  %v628_v20 = vld [vmem:[%s2766_s2 + $0x100] sm:$0xff]  ;;  %v915_v22 = vld [vmem:[%s2766_s2 + $0x1f0] sm:$0xff]  ;;  %v908_v29 = vld [vmem:[%s2766_s2 + $0x1b8] sm:$0xff] }
  0x1f   :  { %124 = vperm.xlu1 %2079, %v58_v31   ;;  %1903 = vmatmul.mubr.msk.f32.gmra.mxu0 %vm242_vm0, %v29_v32  ;;  %v913_v24 = vld [vmem:[%s2766_s2 + $0x1e0] sm:$0xff]  ;;  %v911_v26 = vld [vmem:[%s2766_s2 + $0x1d0] sm:$0xff]  ;;  %v906_v31 = vld [vmem:[%s2766_s2 + $0x1a8] sm:$0xff] }
  0x20   :  { %1905 = vmatprep.mubr.msk.f32.mxu0 %vm242_vm0, %v30_v33  ;;  %v909_v28 = vld [vmem:[%s2766_s2 + $0x1c0] sm:$0xff]  ;;  %v907_v30 = vld [vmem:[%s2766_s2 + $0x1b0] sm:$0xff]  ;;  %v904_v33 = vld [vmem:[%s2766_s2 + $0x198] sm:$0xff] }
  0x21   :  { %v905_v32 = vld [vmem:[%s2766_s2 + $0x1a0] sm:$0xff] }
  0x22   :  { %199 = vperm.xlu0 %2078, %v73_v34   ;;  %v903_v34 = vld [vmem:[%s2766_s2 + $0x190] sm:$0xff] }
  0x23   :  { %119 = vperm.xlu1 %2079, %v57_v35   ;;  %1906 = vmatmul.mubr.msk.f32.gmra.mxu0 %vm242_vm0, %v31_v36  ;;  %v902_v35 = vld [vmem:[%s2766_s2 + $0x188] sm:$0xff]  ;;  %v901_v36 = vld [vmem:[%s2766_s2 + $0x180] sm:$0xff] }
  0x24   :  { %1908 = vmatprep.mubr.msk.f32.mxu0 %vm242_vm0, %v32_v37  ;;  %v1173_v37 = vld [vmem:[%s2766_s2 + $0x238] sm:$0xff] }
  0x26   :  { %194 = vperm.xlu0 %2078, %v72_v38   ;;  %v1172_v38 = vld [vmem:[%s2766_s2 + $0x230] sm:$0xff] }
  0x27   :  { %114 = vperm.xlu1 %2079, %v56_v39   ;;  %1909 = vmatmul.mubr.msk.f32.gmra.mxu0 %vm242_vm0, %v33_v40  ;;  %v1171_v39 = vld [vmem:[%s2766_s2 + $0x228] sm:$0xff]  ;;  %v1170_v40 = vld [vmem:[%s2766_s2 + $0x220] sm:$0xff] }
  0x28   :  { %1911 = vmatprep.mubr.msk.f32.mxu0 %vm242_vm0, %v34_v41  ;;  %v1169_v41 = vld [vmem:[%s2766_s2 + $0x218] sm:$0xff] }
  0x2a   :  { %189 = vperm.xlu0 %2078, %v71_v42   ;;  %v1168_v42 = vld [vmem:[%s2766_s2 + $0x210] sm:$0xff] }
  0x2b   :  { %109 = vperm.xlu1 %2079, %v55_v43   ;;  %1912 = vmatmul.mubr.msk.f32.gmra.mxu0 %vm242_vm0, %v35_v44  ;;  %v1167_v43 = vld [vmem:[%s2766_s2 + $0x208] sm:$0xff]  ;;  %v1166_v44 = vld [vmem:[%s2766_s2 + $0x200] sm:$0xff] }
  0x2c   :  { %1914 = vmatprep.mubr.msk.f32.mxu0 %vm242_vm0, %v36_v45  ;;  %v1334_v45 = vld [vmem:[%s2766_s2 + $0x258] sm:$0xff] }
  0x2e   :  { %184 = vperm.xlu0 %2078, %v70_v46   ;;  %v1333_v46 = vld [vmem:[%s2766_s2 + $0x250] sm:$0xff] }
  0x2f   :  { %104 = vperm.xlu1 %2079, %v54_v47   ;;  %1915 = vmatmul.mubr.msk.f32.gmra.mxu0 %vm242_vm0, %v37_v48  ;;  %v1332_v47 = vld [vmem:[%s2766_s2 + $0x248] sm:$0xff]  ;;  %v1331_v48 = vld [vmem:[%s2766_s2 + $0x240] sm:$0xff] }
  0x30   :  { %1917 = vmatprep.mubr.msk.f32.mxu0 %vm242_vm0, %v38_v49  ;;  %v1460_v49 = vld [vmem:[%s2766_s2 + $0x268] sm:$0xff] }
  0x32   :  { %179 = vperm.xlu0 %2078, %v69_v50   ;;  %v1459_v50 = vld [vmem:[%s2766_s2 + $0x260] sm:$0xff] }
  0x33   :  { %99 = vperm.xlu1 %2079, %v53_v51   ;;  %1918 = vmatmul.mubr.msk.f32.gmra.mxu0 %vm242_vm0, %v39_v52  ;;  %v1555_v51 = vld [vmem:[%s2766_s2 + $0x270] sm:$0x1]  ;;  %v597_v52 = vld [vmem:[%s2768_s1 + $0x208] sm:$0xff] }
  0x34   :  { %1920 = vmatprep.mubr.msk.f32.mxu0 %vm242_vm0, %v40_v53  ;;  %788 = vmatprep.mubr.f32.mxu1 %v597_v52 }
  0x36   :  { %174 = vperm.xlu0 %2078, %v68_v54  }
  0x37   :  { %94 = vperm.xlu1 %2079, %v52_v55   ;;  %1921 = vmatmul.mubr.msk.f32.gmra.mxu0 %vm242_vm0, %v41_v56 }
  0x38   :  { %1923 = vmatprep.mubr.msk.f32.mxu0 %vm242_vm0, %v42_v57 }
  0x3a   :  { %169 = vperm.xlu0 %2078, %v67_v58  }
  0x3b   :  { %89 = vperm.xlu1 %2079, %v51_v59   ;;  %1924 = vmatmul.mubr.msk.f32.gmra.mxu0 %vm242_vm0, %v43_v60 }
  0x3c   :  { %1926 = vmatprep.mubr.msk.f32.mxu0 %vm242_vm0, %v44_v61 }
  0x3e   :  { %164 = vperm.xlu0 %2078, %v66_v62  }
  0x3f   :  { %84 = vperm.xlu1 %2079, %v50_v63   ;;  %1927 = vmatmul.mubr.msk.f32.gmra.mxu0 %vm242_vm0, %v45_v0 }
  0x40   :  { %1929 = vmatprep.mubr.msk.f32.mxu0 %vm242_vm0, %v46_v1 }
  0x42   :  { %721 = vperm.xlu0 %2078, %v643_v2  }
  0x43   :  { %716 = vperm.xlu1 %2079, %v642_v3   ;;  %1930 = vmatmul.mubr.msk.f32.gmra.mxu0 %vm242_vm0, %v47_v4 }
  0x44   :  { %1932 = vmatprep.mubr.msk.f32.mxu0 %vm242_vm0, %v48_v5 }
  0x46   :  { %711 = vperm.xlu0 %2078, %v641_v6  }
  0x47   :  { %706 = vperm.xlu1 %2079, %v640_v7   ;;  %1933 = vmatmul.mubr.msk.f32.gmra.mxu0 %vm242_vm0, %v49_v8 }
  0x4a   :  { %701 = vperm.xlu0 %2078, %v639_v9  }
  0x4b   :  { %696 = vperm.xlu1 %2079, %v638_v10  }
  0x4e   :  { %691 = vperm.xlu0 %2078, %v637_v11  }
  0x4f   :  { %686 = vperm.xlu1 %2079, %v636_v12  }
  0x52   :  { %681 = vperm.xlu0 %2078, %v635_v13  }
  0x53   :  { %676 = vperm.xlu1 %2079, %v634_v14  }
  0x56   :  { %671 = vperm.xlu0 %2078, %v633_v15  }
  0x57   :  { %666 = vperm.xlu1 %2079, %v632_v16  }
  0x5a   :  { %661 = vperm.xlu0 %2078, %v631_v17  }
  0x5b   :  { %656 = vperm.xlu1 %2079, %v630_v18  }
  0x5e   :  { %651 = vperm.xlu0 %2078, %v629_v19  }
  0x5f   :  { %646 = vperm.xlu1 %2079, %v628_v20  }
  0x62   :  { %994 = vperm.xlu0 %2078, %v916_v21  }
  0x63   :  { %989 = vperm.xlu1 %2079, %v915_v22  }
  0x66   :  { %984 = vperm.xlu0 %2078, %v914_v23  }
  0x67   :  { %979 = vperm.xlu1 %2079, %v913_v24  }
  0x6a   :  { %974 = vperm.xlu0 %2078, %v912_v25  }
  0x6b   :  { %969 = vperm.xlu1 %2079, %v911_v26  }
  0x6e   :  { %964 = vperm.xlu0 %2078, %v910_v27  }
  0x6f   :  { %959 = vperm.xlu1 %2079, %v909_v28  }
  0x72   :  { %954 = vperm.xlu0 %2078, %v908_v29  }
  0x73   :  { %949 = vperm.xlu1 %2079, %v907_v30  }
  0x76   :  { %944 = vperm.xlu0 %2078, %v906_v31  }
  0x77   :  { %939 = vperm.xlu1 %2079, %v905_v32  }
  0x7a   :  { %934 = vperm.xlu0 %2078, %v904_v33  }
  0x7b   :  { %929 = vperm.xlu1 %2079, %v903_v34  }
  0x7d   :  { %v240_v53 = vpop.permute.xlu0 %239  ;;  %v235_v54 = vpop.permute.xlu1 %234 }
  0x7e   :  { %924 = vperm.xlu0 %2078, %v902_v35  }
  0x7f   :  { %919 = vperm.xlu1 %2079, %v901_v36  }
  0x81   :  { %v160_v57 = vpop.permute.xlu0 %159 }
  0x82   :  { %1211 = vperm.xlu0 %2078, %v1173_v37   ;;  %v155_v59 = vpop.permute.xlu1 %154 }
  0x83   :  { %1206 = vperm.xlu1 %2079, %v1172_v38  }
  0x85   :  { %v230_v62 = vpop.permute.xlu0 %229 }
  0x86   :  { %1201 = vperm.xlu0 %2078, %v1171_v39   ;;  %v150_v0 = vpop.permute.xlu1 %149 }
  0x87   :  { %1196 = vperm.xlu1 %2079, %v1170_v40  }
  0x89   :  { %v225_v3 = vpop.permute.xlu0 %224 }
  0x8a   :  { %1191 = vperm.xlu0 %2078, %v1169_v41   ;;  %v145_v5 = vpop.permute.xlu1 %144 }
  0x8b   :  { %1186 = vperm.xlu1 %2079, %v1168_v42  }
  0x8d   :  { %v220_v8 = vpop.permute.xlu0 %219 }
  0x8e   :  { %1181 = vperm.xlu0 %2078, %v1167_v43   ;;  %v140_v10 = vpop.permute.xlu1 %139 }
  0x8f   :  { %1176 = vperm.xlu1 %2079, %v1166_v44  }
  0x91   :  { %v215_v13 = vpop.permute.xlu0 %214 }
  0x92   :  { %1352 = vperm.xlu0 %2078, %v1334_v45   ;;  %v135_v15 = vpop.permute.xlu1 %134 }
  0x93   :  { %1347 = vperm.xlu1 %2079, %v1333_v46  }
  0x95   :  { %v210_v18 = vpop.permute.xlu0 %209 }
  0x96   :  { %1342 = vperm.xlu0 %2078, %v1332_v47   ;;  %v130_v20 = vpop.permute.xlu1 %129 }
  0x97   :  { %1337 = vperm.xlu1 %2079, %v1331_v48  }
  0x99   :  { %v205_v23 = vpop.permute.xlu0 %204 }
  0x9a   :  { %1468 = vperm.xlu0 %2078, %v1460_v49   ;;  %v125_v25 = vpop.permute.xlu1 %124 }
  0x9b   :  { %1463 = vperm.xlu1 %2079, %v1459_v50  }
  0x9d   :  { %v200_v28 = vpop.permute.xlu0 %199 }
  0x9e   :  { %1558 = vperm.xlu0 %2078, %v1555_v51   ;;  %v120_v30 = vpop.permute.xlu1 %119 }
  0xa1   :  { %v195_v33 = vpop.permute.xlu0 %194 }
  0xa2   :  { %v115_v35 = vpop.permute.xlu1 %114 }
  0xa5   :  { %v190_v38 = vpop.permute.xlu0 %189 }
  0xa6   :  { %v110_v40 = vpop.permute.xlu1 %109 }
  0xa9   :  { %v185_v49 = vpop.permute.xlu0 %184 }
  0xaa   :  { %v105_v52 = vpop.permute.xlu1 %104 }
  0xcb   :  { %v2487_v55 = vpop.f32.mrf.mxu0 }
  0xcc   :  { %2770 = vst [vmem:[#allocation2_spill] sm:$0xff] %v2487_v55 }
  0xcd   :  { %v2489_v56 = vpop.f32.mrf.mxu0 }
  0xce   :  { %2771 = vst [vmem:[#allocation3_spill] sm:$0xff] %v2489_v56 }
  0xcf   :  { %v2491_v58 = vpop.f32.mrf.mxu0 }
  0xd1   :  { %v2493_v60 = vpop.f32.mrf.mxu0 }
  0xd2   :  { %2772 = vst [vmem:[#allocation4_spill] sm:$0xff] %v2493_v60 }
  0xd3   :  { %v2495_v61 = vpop.f32.mrf.mxu0 }
  0xd5   :  { %v2497_v63 = vpop.f32.mrf.mxu0 }
  0xd7   :  { %v2499_v1 = vpop.f32.mrf.mxu0 }
  0xd9   :  { %v2501_v2 = vpop.f32.mrf.mxu0 }
  0xdb   :  { %v2503_v4 = vpop.f32.mrf.mxu0 }
  0xdd   :  { %v2505_v6 = vpop.f32.mrf.mxu0 }
  0xdf   :  { %v1904_v7 = vpop.f32.mrf.mxu0 }
  0xe1   :  { %v455_v9 = vpop.f32.mrf.mxu0 }
  0xe3   :  { %v1907_v11 = vpop.f32.mrf.mxu0 }
  0xe4   :  { %v471_v50 = vadd.f32 %v1907_v11, %v150_v0  ;;  %v100_v11 = vpop.permute.xlu1 %99 }
  0xe5   :  { %v465_v12 = vpop.f32.mrf.mxu0 }
  0xe6   :  { %v466_v55 = vadd.f32 %v465_v12, %v145_v5  ;;  %v451_v5 = vadd.f32 %v2503_v4, %v130_v20 }
  0xe7   :  { %v1910_v14 = vpop.f32.mrf.mxu0 }
  0xe8   :  { %v481_v41 = vadd.f32 %v1910_v14, %v160_v57  ;;  %v461_v57 = vadd.f32 %v1904_v7, %v140_v10  ;;  %v456_v14 = vadd.f32 %v455_v9, %v135_v15  ;;  %v576_v0 = vmax.f32 %v466_v55, 0.0 }
  0xe9   :  { %v475_v16 = vpop.f32.mrf.mxu0  ;;  %v446_v7 = vadd.f32 %v2505_v6, %v125_v25  ;;  %v441_v9 = vadd.f32 %v2499_v1, %v120_v30  ;;  %v573_v15 = vmax.f32 %v451_v5, 0.0  ;;  %v606_v5 = vld [vmem:[%s2768_s1 + $0x250] sm:$0xff] }
  0xea   :  { %v476_v44 = vadd.f32 %v475_v16, %v155_v59  ;;  %v579_v51 = vmax.f32 %v481_v41, 0.0  ;;  %v575_v12 = vmax.f32 %v461_v57, 0.0  ;;  %v574_v10 = vmax.f32 %v456_v14, 0.0  ;;  %v596_v57 = vld [vmem:[%s2768_s1 + $0x200] sm:$0xff]  ;;  %v603_v14 = vld [vmem:[%s2768_s1 + $0x238] sm:$0xff] }
  0xeb   :  { %v2507_v17 = vpop.f32.mrf.mxu0  ;;  %v572_v20 = vmax.f32 %v446_v7, 0.0  ;;  %v571_v25 = vmax.f32 %v441_v9, 0.0  ;;  %v610_v7 = vld [vmem:[%s2768_s1 + $0x270] sm:$0xff]  ;;  %v617_v9 = vld [vmem:[%s2768_s1 + $0x2a8] sm:$0xff] }
  0xec   :  { %2773 = vst [vmem:[#allocation5_spill] sm:$0xff] %v2507_v17  ;;  %v578_v17 = vmax.f32 %v476_v44, 0.0 }
  0xed   :  { %v2509_v19 = vpop.f32.mrf.mxu0 }
  0xee   :  { %2774 = vst [vmem:[#allocation6_spill] sm:$0xff] %v2509_v19 }
  0xef   :  { %v2511_v21 = vpop.f32.mrf.mxu0 }
  0xf1   :  { %v2513_v22 = vpop.f32.mrf.mxu0 }
  0xf2   :  { %2775 = vst [vmem:[#allocation7_spill] sm:$0xff] %v2513_v22 }
  0xf3   :  { %v2515_v24 = vpop.f32.mrf.mxu0 }
  0xf4   :  { %v511_v6 = vadd.f32 %v2515_v24, %v190_v38  ;;  %v421_v24 = vadd.f32 %v2491_v58, %v100_v11  ;;  %v605_v11 = vld [vmem:[%s2768_s1 + $0x248] sm:$0xff] }
  0xf5   :  { %v2517_v26 = vpop.f32.mrf.mxu0 }
  0xf6   :  { %v506_v1 = vadd.f32 %v2517_v26, %v185_v49  ;;  %v2777_v26 = vld [vmem:[#allocation4_spill] sm:$0xff] }
  0xf7   :  { %v1922_v27 = vpop.f32.mrf.mxu0 }
  0xf9   :  { %v2519_v29 = vpop.f32.mrf.mxu0 }
  0xfa   :  { %v516_v4 = vadd.f32 %v2519_v29, %v195_v33  ;;  %v426_v29 = vadd.f32 %v2497_v63, %v105_v52  ;;  %v2778_v63 = vld [vmem:[#allocation5_spill] sm:$0xff] }
  0xfb   :  { %v1925_v31 = vpop.f32.mrf.mxu0 }
  0xfd   :  { %v525_v32 = vpop.f32.mrf.mxu0 }
  0xff   :  { %v1928_v34 = vpop.f32.mrf.mxu0 }
 0x100   :  { %v541_v60 = vadd.f32 %v1928_v34, %v220_v8  ;;  %v526_v8 = vadd.f32 %v525_v32, %v205_v23  ;;  %v431_v23 = vadd.f32 %v2495_v61, %v110_v40  ;;  %v585_v32 = vmax.f32 %v511_v6, 0.0  ;;  %v2776_v61 = vld [vmem:[#allocation7_spill] sm:$0xff]  ;;  %v622_v6 = vld [vmem:[%s2768_s1 + $0x2d0] sm:$0xff] }
 0x101   :  { %v535_v36 = vpop.f32.mrf.mxu0 }
 0x102   :  { %v536_v59 = vadd.f32 %v535_v36, %v215_v13  ;;  %v591_v16 = vmax.f32 %v541_v60, 0.0  ;;  %v95_v60 = vpop.permute.xlu1 %94  ;;  %v569_v33 = vmax.f32 %v431_v23, 0.0  ;;  %v624_v23 = vld [vmem:[%s2768_s1 + $0x2e0] sm:$0xff] }
 0x103   :  { %v1931_v37 = vpop.f32.mrf.mxu0  ;;  %v416_v36 = vadd.f32 %v2777_v26, %v95_v60  ;;  %v619_v60 = vld [vmem:[%s2768_s1 + $0x2b8] sm:$0xff] }
 0x104   :  { %v551_v46 = vadd.f32 %v1931_v37, %v230_v62  ;;  %v568_v37 = vmax.f32 %v426_v29, 0.0 }
 0x105   :  { %v545_v39 = vpop.f32.mrf.mxu0 }
 0x106   :  { %v546_v56 = vadd.f32 %v545_v39, %v225_v3  ;;  %v593_v22 = vmax.f32 %v551_v46, 0.0  ;;  %v531_v3 = vadd.f32 %v1925_v31, %v210_v18  ;;  %v436_v18 = vadd.f32 %v2501_v2, %v115_v35  ;;  %v90_v2 = vpop.permute.xlu1 %89  ;;  %v2781_v46 = vld [vmem:[#allocation3_spill] sm:$0xff] }
 0x107   :  { %v1934_v42 = vpop.f32.mrf.mxu0  ;;  %v584_v35 = vmax.f32 %v506_v1, 0.0  ;;  %v626_v1 = vld [vmem:[%s2768_s1 + $0x2f0] sm:$0xff] }
 0x108   :  { %v561_v43 = vadd.f32 %v1934_v42, %v240_v53  ;;  %v577_v53 = vmax.f32 %v471_v50, 0.0  ;;  %v592_v62 = vmax.f32 %v546_v56, 0.0  ;;  %v521_v56 = vadd.f32 %v1922_v27, %v200_v28 }
 0x109   :  { %v555_v45 = vpop.f32.mrf.mxu0  ;;  %v589_v13 = vmax.f32 %v531_v3, 0.0  ;;  %v586_v27 = vmax.f32 %v516_v4, 0.0  ;;  %v570_v30 = vmax.f32 %v436_v18, 0.0  ;;  %v567_v42 = vmax.f32 %v421_v24, 0.0  ;;  %v604_v3 = vld [vmem:[%s2768_s1 + $0x240] sm:$0xff]  ;;  %v618_v4 = vld [vmem:[%s2768_s1 + $0x2b0] sm:$0xff] }
 0x10a   :  { %v556_v47 = vadd.f32 %v555_v45, %v235_v54  ;;  %v595_v48 = vmax.f32 %v561_v43, 0.0  ;;  %v180_v54 = vpop.permute.xlu0 %179  ;;  %v85_v58 = vpop.permute.xlu1 %84  ;;  %v2780_v43 = vld [vmem:[#allocation6_spill] sm:$0xff] }
 0x10b   :  { %v501_v31 = vadd.f32 %v2511_v21, %v180_v54  ;;  %v2779_v21 = vld [vmem:[#allocation2_spill] sm:$0xff] }
 0x10c   :  { %v594_v19 = vmax.f32 %v556_v47, 0.0  ;;  %1722 = vmatprep.subr.mxu1 %v595_v48  ;;  %v411_v41 = vadd.f32 %v2779_v21, %v90_v2  ;;  %v406_v47 = vadd.f32 %v2781_v46, %v85_v58  ;;  %v566_v48 = vmax.f32 %v416_v36, 0.0  ;;  %v600_v54 = vld [vmem:[%s2768_s1 + $0x220] sm:$0xff] }
 0x10d   :  { %1723 = vmatpush3.msra.mxu1 %v579_v51  ;;  %v583_v39 = vmax.f32 %v501_v31, 0.0  ;;  %v620_v18 = vld [vmem:[%s2768_s1 + $0x2c0] sm:$0xff] }
 0x10e   :  { %1724 = vmatprep.subr.mxu1 %v594_v19  ;;  %v590_v19 = vmax.f32 %v536_v59, 0.0  ;;  %v175_v55 = vpop.permute.xlu0 %174  ;;  %v565_v50 = vmax.f32 %v411_v41, 0.0  ;;  %v564_v52 = vmax.f32 %v406_v47, 0.0  ;;  %v598_v59 = vld [vmem:[%s2768_s1 + $0x210] sm:$0xff] }
 0x10f   :  { %1725 = vmatpush3.msra.mxu1 %v578_v17  ;;  %v588_v17 = vmax.f32 %v526_v8, 0.0  ;;  %v496_v34 = vadd.f32 %v2776_v61, %v175_v55  ;;  %v608_v8 = vld [vmem:[%s2768_s1 + $0x260] sm:$0xff]  ;;  %v614_v55 = vld [vmem:[%s2768_s1 + $0x290] sm:$0xff] }
 0x110   :  { %1726 = vmatprep.subr.mxu1 %v593_v22  ;;  %v587_v22 = vmax.f32 %v521_v56, 0.0  ;;  %v612_v56 = vld [vmem:[%s2768_s1 + $0x280] sm:$0xff] }
 0x111   :  { %1727 = vmatpush3.msra.mxu1 %v577_v53  ;;  %v582_v45 = vmax.f32 %v496_v34, 0.0  ;;  %v599_v53 = vld [vmem:[%s2768_s1 + $0x218] sm:$0xff] }
 0x112   :  { %1728 = vmatprep.subr.mxu1 %v592_v62  ;;  %v170_v28 = vpop.permute.xlu0 %169  ;;  %v601_v62 = vld [vmem:[%s2768_s1 + $0x228] sm:$0xff] }
 0x113   :  { %1729 = vmatpush3.msra.mxu1 %v576_v0  ;;  %v491_v38 = vadd.f32 %v2778_v63, %v170_v28  ;;  %v602_v0 = vld [vmem:[%s2768_s1 + $0x230] sm:$0xff] }
 0x114   :  { %1730 = vmatprep.subr.mxu1 %v591_v16  ;;  %v607_v16 = vld [vmem:[%s2768_s1 + $0x258] sm:$0xff] }
 0x115   :  { %1731 = vmatpush3.msra.mxu1 %v575_v12  ;;  %v581_v49 = vmax.f32 %v491_v38, 0.0  ;;  %v609_v12 = vld [vmem:[%s2768_s1 + $0x268] sm:$0xff] }
 0x116   :  { %1732 = vmatprep.subr.mxu1 %v590_v19  ;;  %v165_v40 = vpop.permute.xlu0 %164  ;;  %v611_v19 = vld [vmem:[%s2768_s1 + $0x278] sm:$0xff] }
 0x117   :  { %1733 = vmatpush3.msra.mxu1 %v574_v10  ;;  %v486_v44 = vadd.f32 %v2780_v43, %v165_v40  ;;  %v613_v10 = vld [vmem:[%s2768_s1 + $0x288] sm:$0xff] }
 0x118   :  { %1734 = vmatprep.subr.mxu1 %v589_v13  ;;  %v615_v13 = vld [vmem:[%s2768_s1 + $0x298] sm:$0xff] }
 0x119   :  { %1735 = vmatpush3.msra.mxu1 %v573_v15  ;;  %v580_v51 = vmax.f32 %v486_v44, 0.0  ;;  %v616_v15 = vld [vmem:[%s2768_s1 + $0x2a0] sm:$0xff] }
 0x11a   :  { %1736 = vmatprep.subr.mxu1 %v588_v17  ;;  %v621_v17 = vld [vmem:[%s2768_s1 + $0x2c8] sm:$0xff] }
 0x11b   :  { %1737 = vmatpush3.msra.mxu1 %v572_v20  ;;  %v623_v20 = vld [vmem:[%s2768_s1 + $0x2d8] sm:$0xff] }
 0x11c   :  { %1738 = vmatprep.subr.mxu1 %v587_v22  ;;  %v625_v22 = vld [vmem:[%s2768_s1 + $0x2e8] sm:$0xff] }
 0x11d   :  { %1739 = vmatpush3.msra.mxu1 %v571_v25  ;;  %v627_v25 = vld [vmem:[%s2768_s1 + $0x2f8] sm:$0xff] }
 0x11e   :  { %1740 = vmatprep.subr.mxu1 %v586_v27  ;;  %v885_v27 = vld [vmem:[%s2768_s1 + $0x300] sm:$0xff] }
 0x11f   :  { %1741 = vmatpush3.msra.mxu1 %v570_v30  ;;  %1967 = vmatprep.mubr.f32.mxu0 %v885_v27 }
 0x120   :  { %1742 = vmatprep.subr.mxu1 %v585_v32 }
 0x121   :  { %1743 = vmatpush3.msra.mxu1 %v569_v33 }
 0x122   :  { %1744 = vmatprep.subr.mxu1 %v584_v35 }
 0x123   :  { %1745 = vmatpush3.msra.mxu1 %v568_v37 }
 0x124   :  { %1746 = vmatprep.subr.mxu1 %v583_v39 }
 0x125   :  { %1747 = vmatpush3.msra.mxu1 %v567_v42 }
 0x126   :  { %1748 = vmatprep.subr.mxu1 %v582_v45 }
 0x127   :  { %1749 = vmatpush3.msra.mxu1 %v566_v48 }
 0x128   :  { %1750 = vmatprep.subr.mxu1 %v581_v49 }
 0x129   :  { %1751 = vmatpush3.msra.mxu1 %v565_v50  ;;  %v722_v50 = vpop.permute.xlu0 %721 }
 0x12a   :  { %1752 = vmatprep.subr.mxu1 %v580_v51 }
 0x12b   :  { %1753 = vmatpush3.msra.mxu1 %v564_v52  ;;  %v717_v52 = vpop.permute.xlu1 %716 }
 0x12c   :  { %789 = vmatmul.mubr.f32.vlgmr.msra.gmra.mxu1 %v596_v57 }
 0x12d   :  { %793 = vmatprep.mubr.f32.mxu1 %v599_v53 }
 0x130   :  { %794 = vmatmul.mubr.f32.gmra.mxu1 %v598_v59  ;;  %v712_v59 = vpop.permute.xlu0 %711 }
 0x131   :  { %798 = vmatprep.mubr.f32.mxu1 %v601_v62 }
 0x134   :  { %799 = vmatmul.mubr.f32.gmra.mxu1 %v600_v54  ;;  %v707_v54 = vpop.permute.xlu1 %706 }
 0x135   :  { %803 = vmatprep.mubr.f32.mxu1 %v603_v14 }
 0x138   :  { %804 = vmatmul.mubr.f32.gmra.mxu1 %v602_v0 }
 0x139   :  { %808 = vmatprep.mubr.f32.mxu1 %v605_v11  ;;  %v702_v11 = vpop.permute.xlu0 %701 }
 0x13c   :  { %809 = vmatmul.mubr.f32.gmra.mxu1 %v604_v3 }
 0x13d   :  { %813 = vmatprep.mubr.f32.mxu1 %v607_v16 }
 0x140   :  { %814 = vmatmul.mubr.f32.gmra.mxu1 %v606_v5  ;;  %v697_v5 = vpop.permute.xlu1 %696 }
 0x141   :  { %818 = vmatprep.mubr.f32.mxu1 %v609_v12 }
 0x144   :  { %819 = vmatmul.mubr.f32.gmra.mxu1 %v608_v8 }
 0x145   :  { %823 = vmatprep.mubr.f32.mxu1 %v611_v19 }
 0x148   :  { %824 = vmatmul.mubr.f32.gmra.mxu1 %v610_v7 }
 0x149   :  { %828 = vmatprep.mubr.f32.mxu1 %v613_v10 }
 0x14c   :  { %829 = vmatmul.mubr.f32.gmra.mxu1 %v612_v56 }
 0x14d   :  { %833 = vmatprep.mubr.f32.mxu1 %v615_v13  ;;  %v692_v13 = vpop.permute.xlu0 %691 }
 0x150   :  { %834 = vmatmul.mubr.f32.gmra.mxu1 %v614_v55 }
 0x151   :  { %838 = vmatprep.mubr.f32.mxu1 %v617_v9 }
 0x154   :  { %839 = vmatmul.mubr.f32.gmra.mxu1 %v616_v15 }
 0x155   :  { %843 = vmatprep.mubr.f32.mxu1 %v619_v60  ;;  %v687_v60 = vpop.permute.xlu1 %686 }
 0x158   :  { %844 = vmatmul.mubr.f32.gmra.mxu1 %v618_v4 }
 0x159   :  { %848 = vmatprep.mubr.f32.mxu1 %v621_v17 }
 0x15c   :  { %849 = vmatmul.mubr.f32.gmra.mxu1 %v620_v18 }
 0x15d   :  { %853 = vmatprep.mubr.f32.mxu1 %v623_v20 }
 0x160   :  { %854 = vmatmul.mubr.f32.gmra.mxu1 %v622_v6 }
 0x161   :  { %858 = vmatprep.mubr.f32.mxu1 %v625_v22 }
 0x164   :  { %859 = vmatmul.mubr.f32.gmra.mxu1 %v624_v23  ;;  %v682_v23 = vpop.permute.xlu0 %681 }
 0x165   :  { %863 = vmatprep.mubr.f32.mxu1 %v627_v25 }
 0x168   :  { %864 = vmatmul.mubr.f32.gmra.mxu1 %v626_v1 }
 0x1ec   :  { %v1754_v28 = vpop.f32.mrf.mxu1 }
 0x1ee   :  { %v1755_v29 = vpop.f32.mrf.mxu1 }
 0x1ef   :  { %v2634_v30 = vadd.f32 %v1755_v29, %v1754_v28  ;;  %v677_v28 = vpop.permute.xlu1 %676 }
 0x1f0   :  { %v1757_v2 = vpop.f32.mrf.mxu1 }
 0x1f2   :  { %v1758_v31 = vpop.f32.mrf.mxu1 }
 0x1f3   :  { %v2636_v32 = vadd.f32 %v1758_v31, %v1757_v2 }
 0x1f4   :  { %v1760_v24 = vpop.f32.mrf.mxu1 }
 0x1f6   :  { %v1761_v33 = vpop.f32.mrf.mxu1 }
 0x1f7   :  { %v2638_v61 = vadd.f32 %v1761_v33, %v1760_v24 }
 0x1f8   :  { %v1763_v34 = vpop.f32.mrf.mxu1 }
 0x1fa   :  { %v1764_v35 = vpop.f32.mrf.mxu1 }
 0x1fb   :  { %v2640_v26 = vadd.f32 %v1764_v35, %v1763_v34  ;;  %v672_v35 = vpop.permute.xlu0 %671 }
 0x1fc   :  { %v1766_v36 = vpop.f32.mrf.mxu1 }
 0x1fe   :  { %v1767_v37 = vpop.f32.mrf.mxu1 }
 0x1ff   :  { %v2642_v63 = vadd.f32 %v1767_v37, %v1766_v36 }
 0x200   :  { %v2644_v38 = vpop.f32.mrf.mxu1 }
 0x202   :  { %v2646_v39 = vpop.f32.mrf.mxu1 }
 0x203   :  { %v1771_v36 = vadd.f32 %v2646_v39, %v2644_v38 }
 0x204   :  { %v1772_v40 = vpop.f32.mrf.mxu1 }
 0x206   :  { %v1773_v21 = vpop.f32.mrf.mxu1 }
 0x207   :  { %v1774_v24 = vadd.f32 %v1773_v21, %v1772_v40  ;;  %v662_v40 = vpop.permute.xlu0 %661 }
 0x208   :  { %v1775_v41 = vpop.f32.mrf.mxu1  ;;  %v806_v38 = vadd.f32 %v2640_v26, %v662_v40 }
 0x20a   :  { %v1776_v42 = vpop.f32.mrf.mxu1 }
 0x20b   :  { %v1777_v29 = vadd.f32 %v1776_v42, %v1775_v41  ;;  %v816_v42 = vadd.f32 %v1771_v36, %v672_v35 }
 0x20c   :  { %v1778_v58 = vpop.f32.mrf.mxu1 }
 0x20d   :  { %v826_v37 = vadd.f32 %v1777_v29, %v682_v23  ;;  %v874_v39 = vmax.f32 %v816_v42, 0.0 }
 0x20e   :  { %v1779_v43 = vpop.f32.mrf.mxu1 }
 0x20f   :  { %v1780_v25 = vadd.f32 %v1779_v43, %v1778_v58  ;;  %v667_v43 = vpop.permute.xlu1 %666 }
 0x210   :  { %v1781_v44 = vpop.f32.mrf.mxu1  ;;  %v811_v21 = vadd.f32 %v2642_v63, %v667_v43 }
 0x211   :  { %v831_v33 = vadd.f32 %v1780_v25, %v687_v60 }
 0x212   :  { %v1782_v45 = vpop.f32.mrf.mxu1 }
 0x213   :  { %v1783_v20 = vadd.f32 %v1782_v45, %v1781_v44  ;;  %v821_v44 = vadd.f32 %v1774_v24, %v677_v28  ;;  %v877_v41 = vmax.f32 %v831_v33, 0.0  ;;  %v876_v45 = vmax.f32 %v826_v37, 0.0 }
 0x214   :  { %v1784_v46 = vpop.f32.mrf.mxu1 }
 0x215   :  { %v836_v2 = vadd.f32 %v1783_v20, %v692_v13 }
 0x216   :  { %v1785_v47 = vpop.f32.mrf.mxu1 }
 0x217   :  { %v1786_v4 = vadd.f32 %v1785_v47, %v1784_v46  ;;  %v878_v58 = vmax.f32 %v836_v2, 0.0  ;;  %v875_v46 = vmax.f32 %v821_v44, 0.0  ;;  %v657_v47 = vpop.permute.xlu1 %656 }
 0x218   :  { %v1787_v48 = vpop.f32.mrf.mxu1 }
 0x219   :  { %v841_v1 = vadd.f32 %v1786_v4, %v697_v5  ;;  %v896_v5 = vld [vmem:[%s2768_s1 + $0x3b0] sm:$0xff] }
 0x21a   :  { %v1788_v49 = vpop.f32.mrf.mxu1 }
 0x21b   :  { %v1789_v55 = vadd.f32 %v1788_v49, %v1787_v48  ;;  %v879_v34 = vmax.f32 %v841_v1, 0.0  ;;  %v801_v48 = vadd.f32 %v2638_v61, %v657_v47  ;;  %v873_v49 = vmax.f32 %v811_v21, 0.0  ;;  %v647_v63 = vpop.permute.xlu1 %646  ;;  %v886_v61 = vld [vmem:[%s2768_s1 + $0x310] sm:$0xff] }
 0x21c   :  { %v1790_v51 = vpop.f32.mrf.mxu1 }
 0x21d   :  { %v846_v6 = vadd.f32 %v1789_v55, %v702_v11  ;;  %v893_v11 = vld [vmem:[%s2768_s1 + $0x380] sm:$0xff] }
 0x21e   :  { %v1791_v57 = vpop.f32.mrf.mxu1 }
 0x21f   :  { %v1792_v7 = vadd.f32 %v1791_v57, %v1790_v51  ;;  %v880_v31 = vmax.f32 %v846_v6, 0.0  ;;  %v791_v57 = vadd.f32 %v2634_v30, %v647_v63  ;;  %v888_v30 = vld [vmem:[%s2768_s1 + $0x330] sm:$0xff] }
 0x220   :  { %v1793_v53 = vpop.f32.mrf.mxu1 }
 0x221   :  { %v851_v17 = vadd.f32 %v1792_v7, %v707_v54  ;;  %v890_v54 = vld [vmem:[%s2768_s1 + $0x350] sm:$0xff] }
 0x222   :  { %v1794_v62 = vpop.f32.mrf.mxu1  ;;  %v900_v7 = vld [vmem:[%s2768_s1 + $0x3f0] sm:$0xff] }
 0x223   :  { %v1795_v8 = vadd.f32 %v1794_v62, %v1793_v53  ;;  %v881_v27 = vmax.f32 %v851_v17, 0.0  ;;  %v871_v53 = vmax.f32 %v801_v48, 0.0  ;;  %v889_v62 = vld [vmem:[%s2768_s1 + $0x340] sm:$0xff] }
 0x224   :  { %v1796_v14 = vpop.f32.mrf.mxu1 }
 0x225   :  { %v856_v9 = vadd.f32 %v1795_v8, %v712_v59  ;;  %v869_v59 = vmax.f32 %v791_v57, 0.0  ;;  %v898_v8 = vld [vmem:[%s2768_s1 + $0x3d0] sm:$0xff] }
 0x226   :  { %v1797_v0 = vpop.f32.mrf.mxu1 }
 0x227   :  { %v1798_v16 = vadd.f32 %v1797_v0, %v1796_v14  ;;  %v882_v22 = vmax.f32 %v856_v9, 0.0  ;;  %v891_v14 = vld [vmem:[%s2768_s1 + $0x360] sm:$0xff]  ;;  %v892_v0 = vld [vmem:[%s2768_s1 + $0x370] sm:$0xff] }
 0x228   :  { %v1799_v3 = vpop.f32.mrf.mxu1 }
 0x229   :  { %v861_v10 = vadd.f32 %v1798_v16, %v717_v52  ;;  %v872_v52 = vmax.f32 %v806_v38, 0.0  ;;  %v895_v16 = vld [vmem:[%s2768_s1 + $0x3a0] sm:$0xff] }
 0x22a   :  { %v1800_v12 = vpop.f32.mrf.mxu1 }
 0x22b   :  { %v1801_v19 = vadd.f32 %v1800_v12, %v1799_v3  ;;  %v883_v18 = vmax.f32 %v861_v10, 0.0  ;;  %v894_v3 = vld [vmem:[%s2768_s1 + $0x390] sm:$0xff]  ;;  %v897_v12 = vld [vmem:[%s2768_s1 + $0x3c0] sm:$0xff] }
 0x22c   :  { %v1158_v10 = vld [vmem:[%s2768_s1 + $0x400] sm:$0xff] }
 0x22d   :  { %v866_v56 = vadd.f32 %v1801_v19, %v722_v50  ;;  %v652_v50 = vpop.permute.xlu0 %651  ;;  %v899_v19 = vld [vmem:[%s2768_s1 + $0x3e0] sm:$0xff]  ;;  %2023 = vmatprep.mubr.f32.mxu1 %v1158_v10 }
 0x22e   :  { %v796_v51 = vadd.f32 %v2636_v32, %v652_v50  ;;  %v887_v32 = vld [vmem:[%s2768_s1 + $0x320] sm:$0xff] }
 0x22f   :  { %v884_v15 = vmax.f32 %v866_v56, 0.0 }
 0x230   :  { %v870_v26 = vmax.f32 %v796_v51, 0.0 }
 0x231   :  { %1935 = vmatprep.subr.mxu0 %v884_v15  ;;  %v995_v4 = vpop.permute.xlu0 %994 }
 0x232   :  { %1936 = vmatpush3.msra.mxu0 %v884_v15 }
 0x233   :  { %1937 = vmatprep.subr.mxu0 %v883_v18 }
 0x234   :  { %1938 = vmatpush3.msra.mxu0 %v883_v18  ;;  %v990_v18 = vpop.permute.xlu1 %989 }
 0x235   :  { %1939 = vmatprep.subr.mxu0 %v882_v22 }
 0x236   :  { %1940 = vmatpush3.msra.mxu0 %v882_v22  ;;  %v985_v22 = vpop.permute.xlu0 %984 }
 0x237   :  { %1941 = vmatprep.subr.mxu0 %v881_v27 }
 0x238   :  { %1942 = vmatpush3.msra.mxu0 %v881_v27  ;;  %v980_v25 = vpop.permute.xlu1 %979 }
 0x239   :  { %1943 = vmatprep.subr.mxu0 %v880_v31 }
 0x23a   :  { %1944 = vmatpush3.msra.mxu0 %v880_v31  ;;  %v975_v28 = vpop.permute.xlu0 %974 }
 0x23b   :  { %1945 = vmatprep.subr.mxu0 %v879_v34 }
 0x23c   :  { %1946 = vmatpush3.msra.mxu0 %v879_v34  ;;  %v970_v2 = vpop.permute.xlu1 %969 }
 0x23d   :  { %1947 = vmatprep.subr.mxu0 %v878_v58 }
 0x23e   :  { %1948 = vmatpush3.msra.mxu0 %v878_v58  ;;  %v965_v34 = vpop.permute.xlu0 %964 }
 0x23f   :  { %1949 = vmatprep.subr.mxu0 %v877_v41 }
 0x240   :  { %1950 = vmatpush3.msra.mxu0 %v877_v41  ;;  %v960_v43 = vpop.permute.xlu1 %959 }
 0x241   :  { %1951 = vmatprep.subr.mxu0 %v876_v45 }
 0x242   :  { %1952 = vmatpush3.msra.mxu0 %v876_v45  ;;  %v955_v40 = vpop.permute.xlu0 %954 }
 0x243   :  { %1953 = vmatprep.subr.mxu0 %v875_v46 }
 0x244   :  { %1954 = vmatpush3.msra.mxu0 %v875_v46  ;;  %v950_v47 = vpop.permute.xlu1 %949 }
 0x245   :  { %1955 = vmatprep.subr.mxu0 %v874_v39 }
 0x246   :  { %1956 = vmatpush3.msra.mxu0 %v874_v39  ;;  %v945_v50 = vpop.permute.xlu0 %944 }
 0x247   :  { %1957 = vmatprep.subr.mxu0 %v873_v49 }
 0x248   :  { %1958 = vmatpush3.msra.mxu0 %v873_v49  ;;  %v940_v63 = vpop.permute.xlu1 %939 }
 0x249   :  { %1959 = vmatprep.subr.mxu0 %v872_v52 }
 0x24a   :  { %1960 = vmatpush3.msra.mxu0 %v872_v52 }
 0x24b   :  { %1961 = vmatprep.subr.mxu0 %v871_v53 }
 0x24c   :  { %1962 = vmatpush3.msra.mxu0 %v871_v53 }
 0x24d   :  { %1963 = vmatprep.subr.mxu0 %v870_v26 }
 0x24e   :  { %1964 = vmatpush3.msra.mxu0 %v870_v26 }
 0x24f   :  { %1965 = vmatprep.subr.mxu0 %v869_v59 }
 0x250   :  { %1966 = vmatpush3.msra.mxu0 %v869_v59 }
 0x251   :  { %1968 = vmatmul.mubr.f32.vlgmr.msra.gmra.mxu0 %v886_v61  ;;  %v935_v61 = vpop.permute.xlu0 %934 }
 0x252   :  { %1970 = vmatprep.mubr.f32.mxu0 %v887_v32 }
 0x255   :  { %1971 = vmatmul.mubr.f32.gmra.mxu0 %v888_v30 }
 0x256   :  { %1973 = vmatprep.mubr.f32.mxu0 %v889_v62  ;;  %v930_v62 = vpop.permute.xlu1 %929 }
 0x259   :  { %1974 = vmatmul.mubr.f32.gmra.mxu0 %v890_v54 }
 0x25a   :  { %1976 = vmatprep.mubr.f32.mxu0 %v891_v14 }
 0x25d   :  { %1977 = vmatmul.mubr.f32.gmra.mxu0 %v892_v0 }
 0x25e   :  { %1979 = vmatprep.mubr.f32.mxu0 %v893_v11 }
 0x261   :  { %1980 = vmatmul.mubr.f32.gmra.mxu0 %v894_v3  ;;  %v925_v3 = vpop.permute.xlu0 %924 }
 0x262   :  { %1982 = vmatprep.mubr.f32.mxu0 %v895_v16 }
 0x265   :  { %1983 = vmatmul.mubr.f32.gmra.mxu0 %v896_v5 }
 0x266   :  { %1985 = vmatprep.mubr.f32.mxu0 %v897_v12  ;;  %v920_v12 = vpop.permute.xlu1 %919 }
 0x269   :  { %1986 = vmatmul.mubr.f32.gmra.mxu0 %v898_v8 }
 0x26a   :  { %1988 = vmatprep.mubr.f32.mxu0 %v899_v19 }
 0x26d   :  { %1989 = vmatmul.mubr.f32.gmra.mxu0 %v900_v7 }
 0x311   :  { %v2703_v56 = vpop.f32.mrf.mxu0 }
 0x312   :  { %v1069_v16 = vadd.f32 %v2703_v56, %v925_v3  ;;  %v1160_v56 = vld [vmem:[%s2768_s1 + $0x420] sm:$0xff] }
 0x313   :  { %v2705_v13 = vpop.f32.mrf.mxu0 }
 0x314   :  { %v1064_v8 = vadd.f32 %v2705_v13, %v920_v12  ;;  %v1143_v7 = vmax.f32 %v1069_v16, 0.0  ;;  %v1161_v13 = vld [vmem:[%s2768_s1 + $0x430] sm:$0xff] }
 0x315   :  { %v2707_v55 = vpop.f32.mrf.mxu0 }
 0x316   :  { %v1079_v54 = vadd.f32 %v2707_v55, %v935_v61  ;;  %v1142_v10 = vmax.f32 %v1064_v8, 0.0  ;;  %v1159_v55 = vld [vmem:[%s2768_s1 + $0x410] sm:$0xff] }
 0x317   :  { %v2709_v9 = vpop.f32.mrf.mxu0  ;;  %v1458_v8 = vld [vmem:[%s2768_s1 + $0x4d0] sm:$0xff] }
 0x318   :  { %v1074_v0 = vadd.f32 %v2709_v9, %v930_v62  ;;  %v1145_v5 = vmax.f32 %v1079_v54, 0.0  ;;  %v1162_v9 = vld [vmem:[%s2768_s1 + $0x440] sm:$0xff] }
 0x319   :  { %v1975_v15 = vpop.f32.mrf.mxu0 }
 0x31a   :  { %v1089_v26 = vadd.f32 %v1975_v15, %v945_v50  ;;  %v1144_v19 = vmax.f32 %v1074_v0, 0.0  ;;  %v1163_v15 = vld [vmem:[%s2768_s1 + $0x450] sm:$0xff] }
 0x31b   :  { %v1083_v60 = vpop.f32.mrf.mxu0  ;;  %v1328_v50 = vld [vmem:[%s2768_s1 + $0x490] sm:$0xff] }
 0x31c   :  { %v1084_v32 = vadd.f32 %v1083_v60, %v940_v63  ;;  %v1147_v14 = vmax.f32 %v1089_v26, 0.0  ;;  %v1164_v60 = vld [vmem:[%s2768_s1 + $0x460] sm:$0xff] }
 0x31d   :  { %v1978_v17 = vpop.f32.mrf.mxu0  ;;  %v1457_v63 = vld [vmem:[%s2768_s1 + $0x4c0] sm:$0xff] }
 0x31e   :  { %v1099_v51 = vadd.f32 %v1978_v17, %v955_v40  ;;  %v1146_v11 = vmax.f32 %v1084_v32, 0.0  ;;  %v1327_v17 = vld [vmem:[%s2768_s1 + $0x480] sm:$0xff] }
 0x31f   :  { %v1093_v20 = vpop.f32.mrf.mxu0  ;;  %2051 = vmatprep.mubr.msk.f32.mxu0 %vm1355_vm1, %v1327_v17 }
 0x320   :  { %v1094_v57 = vadd.f32 %v1093_v20, %v950_v47  ;;  %v1149_v59 = vmax.f32 %v1099_v51, 0.0  ;;  %v1329_v51 = vld [vmem:[%s2768_s1 + $0x4a0] sm:$0xff] }
 0x321   :  { %v1981_v6 = vpop.f32.mrf.mxu0 }
 0x322   :  { %v1109_v38 = vadd.f32 %v1981_v6, %v965_v34  ;;  %v1148_v30 = vmax.f32 %v1094_v57, 0.0  ;;  %v1212_v6 = vpop.permute.xlu0 %1211 }
 0x323   :  { %v1103_v23 = vpop.f32.mrf.mxu0 }
 0x324   :  { %v1104_v48 = vadd.f32 %v1103_v23, %v960_v43  ;;  %v1151_v52 = vmax.f32 %v1109_v38, 0.0  ;;  %v1207_v23 = vpop.permute.xlu1 %1206 }
 0x325   :  { %v1984_v1 = vpop.f32.mrf.mxu0 }
 0x326   :  { %v1119_v42 = vadd.f32 %v1984_v1, %v975_v28  ;;  %v1150_v53 = vmax.f32 %v1104_v48, 0.0 }
 0x327   :  { %v1113_v27 = vpop.f32.mrf.mxu0 }
 0x328   :  { %v1114_v21 = vadd.f32 %v1113_v27, %v970_v2  ;;  %v1153_v39 = vmax.f32 %v1119_v42, 0.0  ;;  %v1202_v27 = vpop.permute.xlu0 %1201 }
 0x329   :  { %v1987_v29 = vpop.f32.mrf.mxu0 }
 0x32a   :  { %v1129_v36 = vadd.f32 %v1987_v29, %v985_v22  ;;  %v1152_v49 = vmax.f32 %v1114_v21, 0.0  ;;  %v1197_v29 = vpop.permute.xlu1 %1196 }
 0x32b   :  { %v1123_v31 = vpop.f32.mrf.mxu0 }
 0x32c   :  { %v1124_v44 = vadd.f32 %v1123_v31, %v980_v25  ;;  %v1155_v45 = vmax.f32 %v1129_v36, 0.0  ;;  %v1192_v36 = vpop.permute.xlu0 %1191 }
 0x32d   :  { %v1990_v24 = vpop.f32.mrf.mxu0 }
 0x32e   :  { %v1139_v33 = vadd.f32 %v1990_v24, %v995_v4  ;;  %v1154_v46 = vmax.f32 %v1124_v44, 0.0  ;;  %v1165_v4 = vld [vmem:[%s2768_s1 + $0x470] sm:$0xff]  ;;  %v1187_v43 = vpop.permute.xlu1 %1186 }
 0x32f   :  { %v1133_v35 = vpop.f32.mrf.mxu0 }
 0x330   :  { %v1157_v37 = vmax.f32 %v1139_v33, 0.0  ;;  %v1134_v58 = vadd.f32 %v1133_v35, %v990_v18  ;;  %v1182_v40 = vpop.permute.xlu0 %1181 }
 0x332   :  { %v1156_v41 = vmax.f32 %v1134_v58, 0.0  ;;  %1991 = vmatprep.subr.mxu1 %v1157_v37  ;;  %v1177_v47 = vpop.permute.xlu1 %1176 }
 0x333   :  { %1992 = vmatpush3.msra.mxu1 %v1157_v37 }
 0x334   :  { %1993 = vmatprep.subr.mxu1 %v1156_v41  ;;  %v1353_v57 = vpop.permute.xlu0 %1352 }
 0x335   :  { %1994 = vmatpush3.msra.mxu1 %v1156_v41 }
 0x336   :  { %1995 = vmatprep.subr.mxu1 %v1155_v45  ;;  %v1348_v26 = vpop.permute.xlu1 %1347 }
 0x337   :  { %1996 = vmatpush3.msra.mxu1 %v1155_v45 }
 0x338   :  { %1997 = vmatprep.subr.mxu1 %v1154_v46 }
 0x339   :  { %1998 = vmatpush3.msra.mxu1 %v1154_v46 }
 0x33a   :  { %1999 = vmatprep.subr.mxu1 %v1153_v39 }
 0x33b   :  { %2000 = vmatpush3.msra.mxu1 %v1153_v39 }
 0x33c   :  { %2001 = vmatprep.subr.mxu1 %v1152_v49 }
 0x33d   :  { %2002 = vmatpush3.msra.mxu1 %v1152_v49 }
 0x33e   :  { %2003 = vmatprep.subr.mxu1 %v1151_v52 }
 0x33f   :  { %2004 = vmatpush3.msra.mxu1 %v1151_v52  ;;  %v1330_v52 = vld [vmem:[%s2768_s1 + $0x4b0] sm:$0xff] }
 0x340   :  { %2005 = vmatprep.subr.mxu1 %v1150_v53 }
 0x341   :  { %2006 = vmatpush3.msra.mxu1 %v1150_v53 }
 0x342   :  { %2007 = vmatprep.subr.mxu1 %v1149_v59 }
 0x343   :  { %2008 = vmatpush3.msra.mxu1 %v1149_v59 }
 0x344   :  { %2009 = vmatprep.subr.mxu1 %v1148_v30 }
 0x345   :  { %2010 = vmatpush3.msra.mxu1 %v1148_v30  ;;  %v1343_v30 = vpop.permute.xlu0 %1342 }
 0x346   :  { %2011 = vmatprep.subr.mxu1 %v1147_v14 }
 0x347   :  { %2012 = vmatpush3.msra.mxu1 %v1147_v14 }
 0x348   :  { %2013 = vmatprep.subr.mxu1 %v1146_v11 }
 0x349   :  { %2014 = vmatpush3.msra.mxu1 %v1146_v11  ;;  %v1338_v11 = vpop.permute.xlu1 %1337 }
 0x34a   :  { %2015 = vmatprep.subr.mxu1 %v1145_v5 }
 0x34b   :  { %2016 = vmatpush3.msra.mxu1 %v1145_v5 }
 0x34c   :  { %2017 = vmatprep.subr.mxu1 %v1144_v19 }
 0x34d   :  { %2018 = vmatpush3.msra.mxu1 %v1144_v19  ;;  %v2085_v19 = vmov 0.0  }
 0x34e   :  { %2019 = vmatprep.subr.mxu1 %v1143_v7 }
 0x34f   :  { %2020 = vmatpush3.msra.mxu1 %v1143_v7  ;;  %v1469_v7 = vpop.permute.xlu0 %1468 }
 0x350   :  { %2021 = vmatprep.subr.mxu1 %v1142_v10 }
 0x351   :  { %2022 = vmatpush3.msra.mxu1 %v1142_v10 }
 0x352   :  { %2024 = vmatmul.mubr.f32.vlgmr.msra.gmra.mxu1 %v1159_v55  ;;  %2068 = vmatprep.subr.mxu1 %v2085_v19 }
 0x353   :  { %2026 = vmatprep.mubr.f32.mxu1 %v1160_v56  ;;  %v1464_v56 = vpop.permute.xlu1 %1463  ;;  %v1559_v17 = vpop.permute.xlu0 %1558 }
 0x356   :  { %2027 = vmatmul.mubr.f32.gmra.mxu1 %v1161_v13 }
 0x357   :  { %2029 = vmatprep.mubr.f32.mxu1 %v1162_v9 }
 0x35a   :  { %2030 = vmatmul.mubr.f32.gmra.mxu1 %v1163_v15 }
 0x35b   :  { %2032 = vmatprep.mubr.f32.mxu1 %v1164_v60 }
 0x35e   :  { %2033 = vmatmul.mubr.f32.gmra.mxu1 %v1165_v4  ;;  %v1554_v4 = vld [vmem:[%s2768_s1 + $0x4e0] ss:$0 sm:$0xff] }
 0x35f   :  { %2072 = vmatprep.mubr.msk.f32.mxu1 %vm2086_vm2, %v2085_v19 }
 0x412   :  { %v2025_v18 = vpop.f32.mrf.mxu1 }
 0x413   :  { %v1286_v21 = vadd.f32 %v2025_v18, %v1182_v40 }
 0x414   :  { %v1280_v20 = vpop.f32.mrf.mxu1 }
 0x415   :  { %v1281_v38 = vadd.f32 %v1280_v20, %v1177_v47  ;;  %v1320_v48 = vmax.f32 %v1286_v21, 0.0 }
 0x416   :  { %v2028_v22 = vpop.f32.mrf.mxu1 }
 0x417   :  { %v1296_v44 = vadd.f32 %v2028_v22, %v1192_v36  ;;  %v1319_v49 = vmax.f32 %v1281_v38, 0.0 }
 0x418   :  { %v1290_v25 = vpop.f32.mrf.mxu1 }
 0x419   :  { %v1291_v42 = vadd.f32 %v1290_v25, %v1187_v43  ;;  %v1322_v46 = vmax.f32 %v1296_v44, 0.0 }
 0x41a   :  { %v2031_v1 = vpop.f32.mrf.mxu1 }
 0x41b   :  { %v1306_v33 = vadd.f32 %v2031_v1, %v1202_v27  ;;  %v1321_v39 = vmax.f32 %v1291_v42, 0.0 }
 0x41c   :  { %v1300_v28 = vpop.f32.mrf.mxu1 }
 0x41d   :  { %v1301_v37 = vadd.f32 %v1300_v28, %v1197_v29  ;;  %v1324_v41 = vmax.f32 %v1306_v33, 0.0 }
 0x41e   :  { %v2034_v2 = vpop.f32.mrf.mxu1 }
 0x41f   :  { %v1316_v31 = vadd.f32 %v2034_v2, %v1212_v6  ;;  %v1323_v45 = vmax.f32 %v1301_v37, 0.0 }
 0x420   :  { %v1310_v24 = vpop.f32.mrf.mxu1 }
 0x421   :  { %v1326_v34 = vmax.f32 %v1316_v31, 0.0  ;;  %v1311_v35 = vadd.f32 %v1310_v24, %v1207_v23 }
 0x423   :  { %v1325_v58 = vmax.f32 %v1311_v35, 0.0  ;;  %2035 = vmatprep.subr.mxu0 %v1326_v34 }
 0x424   :  { %2036 = vmatpush3.msra.mxu0 %v1326_v34 }
 0x425   :  { %2037 = vmatprep.subr.mxu0 %v1325_v58 }
 0x426   :  { %2038 = vmatpush3.msra.mxu0 %v1325_v58 }
 0x427   :  { %2039 = vmatprep.subr.mxu0 %v1324_v41 }
 0x428   :  { %2040 = vmatpush3.msra.mxu0 %v1324_v41 }
 0x429   :  { %2041 = vmatprep.subr.mxu0 %v1323_v45 }
 0x42a   :  { %2042 = vmatpush3.msra.mxu0 %v1323_v45 }
 0x42b   :  { %2043 = vmatprep.subr.mxu0 %v1322_v46 }
 0x42c   :  { %2044 = vmatpush3.msra.mxu0 %v1322_v46 }
 0x42d   :  { %2045 = vmatprep.subr.mxu0 %v1321_v39 }
 0x42e   :  { %2046 = vmatpush3.msra.mxu0 %v1321_v39 }
 0x42f   :  { %2047 = vmatprep.subr.mxu0 %v1320_v48 }
 0x430   :  { %2048 = vmatpush3.msra.mxu0 %v1320_v48 }
 0x431   :  { %2049 = vmatprep.subr.mxu0 %v1319_v49 }
 0x432   :  { %2050 = vmatpush3.msra.mxu0 %v1319_v49 }
 0x433   :  { %2052 = vmatmul.mubr.msk.f32.vlgmr.msra.gmra.mxu0 %vm1355_vm1, %v1328_v50 }
 0x434   :  { %2054 = vmatprep.mubr.msk.f32.mxu0 %vm1355_vm1, %v1329_v51 }
 0x437   :  { %2055 = vmatmul.mubr.msk.f32.gmra.mxu0 %vm1355_vm1, %v1330_v52 }
 0x438   :  { %2065 = vmatprep.mubr.msk.f32.mxu0 %vm242_vm0, %v1457_v63 }
 0x4f3   :  { %v2053_v53 = vpop.f32.mrf.mxu0 }
 0x4f4   :  { %v1440_v54 = vadd.f32 %v2053_v53, %v1343_v30 }
 0x4f5   :  { %v1434_v59 = vpop.f32.mrf.mxu0 }
 0x4f6   :  { %v1435_v3 = vadd.f32 %v1434_v59, %v1338_v11  ;;  %v1454_v5 = vmax.f32 %v1440_v54, 0.0 }
 0x4f7   :  { %v2056_v61 = vpop.f32.mrf.mxu0 }
 0x4f8   :  { %v1450_v32 = vadd.f32 %v2056_v61, %v1353_v57  ;;  %v1453_v12 = vmax.f32 %v1435_v3, 0.0 }
 0x4f9   :  { %v1444_v62 = vpop.f32.mrf.mxu0 }
 0x4fa   :  { %v1456_v14 = vmax.f32 %v1450_v32, 0.0  ;;  %v1445_v0 = vadd.f32 %v1444_v62, %v1348_v26 }
 0x4fc   :  { %v1455_v16 = vmax.f32 %v1445_v0, 0.0  ;;  %2057 = vmatprep.subr.mxu0 %v1456_v14 }
 0x4fd   :  { %2058 = vmatpush3.msra.mxu0 %v1456_v14 }
 0x4fe   :  { %2059 = vmatprep.subr.mxu0 %v1455_v16 }
 0x4ff   :  { %2060 = vmatpush3.msra.mxu0 %v1455_v16 }
 0x500   :  { %2061 = vmatprep.subr.mxu0 %v1454_v5 }
 0x501   :  { %2062 = vmatpush3.msra.mxu0 %v1454_v5 }
 0x502   :  { %2063 = vmatprep.subr.mxu0 %v1453_v12 }
 0x503   :  { %2064 = vmatpush3.msra.mxu0 %v1453_v12 }
 0x504   :  { %2066 = vmatmul.mubr.msk.f32.vlgmr.msra.gmra.mxu0 %vm242_vm0, %v1458_v8 }
 0x5c4   :  { %v2067_v10 = vpop.f32.mrf.mxu0 }
 0x5c5   :  { %v1549_v55 = vadd.f32 %v2067_v10, %v1469_v7 }
 0x5c6   :  { %v1543_v13 = vpop.f32.mrf.mxu0 }
 0x5c7   :  { %v1553_v9 = vmax.f32 %v1549_v55, 0.0  ;;  %v1544_v15 = vadd.f32 %v1543_v13, %v1464_v56 }
 0x5c9   :  { %v1552_v60 = vmax.f32 %v1544_v15, 0.0  ;;  %2069 = vmatpush3.msra.mxu1 %v1553_v9 }
 0x5ca   :  { %2070 = vmatprep.subr.mxu1 %v2085_v19 }
 0x5cb   :  { %2071 = vmatpush3.msra.mxu1 %v1552_v60 }
 0x5cc   :  { %2073 = vmatmul.mubr.msk.f32.vlgmr.msra.gmra.mxu1 %vm1561_vm3, %v1554_v4 }
 0x68c   :  { %v1631_v18 = vpop.f32.mrf.mxu1 }
 0x68d   :  { %v1632_v20 = vadd.f32 %v1631_v18, %v1559_v17 }
 0x68e   :  { %v2074_v6 = vpop.f32.mrf.mxu1 }
 0x68f   :  { %v1685_v22 = vmul.f32 -1.442695, %v1632_v20 }
 0x691   :  { %2080 = vpow2.f32 %v1685_v22 }
 0x69e   :  { %v2081_v23 = vpop.eup %2080 }
 0x69f   :  { %v1638_v25 = vadd.f32 1.0, %v2081_v23 }
 0x6a1   :  { %2082 = vrcp.f32 %v1638_v25 }
 0x6ae   :  { %v2083_v1 = vpop.eup %2082 }
 0x6af   :  { %1641 = vst [vmem:[%s2769_s3] sm:$0x1] %v2083_v1 }

</bundles_post_ra>
